<compile_context>
chip_gen: v5e
topology: v5e:2x2
jax: 0.10.0
libtpu: 0.0.40
codegen_flags: <defaults>
</compile_context>

<pallas_src>
import jax
import jax.numpy as jnp
from jax.experimental import pallas as pl
from jax.experimental.pallas import tpu as pltpu


def _round_up(n, m):
    return ((n + m - 1) // m) * m


# ---------------------------------------------------------------------------
# Kernel
# ---------------------------------------------------------------------------
def pnet_kernel(x_ref, w1_ref, b1_ref, w2_ref, b2_ref, w3_ref, b3_ref, o_ref):
    wdt = w1_ref.dtype  # weight dtype (f32 or bf16); activations cast to match for the MXU
    # lin1 (+ dropout=identity) + relu
    h1 = jnp.dot(x_ref[...].astype(wdt), w1_ref[...],
                 preferred_element_type=jnp.float32)
    h1 = jnp.maximum(h1 + b1_ref[...], 0.0)
    # lin2 (+ dropout=identity)   (no relu here, matching the PyTorch forward)
    h2 = jnp.dot(h1.astype(wdt), w2_ref[...],
                 preferred_element_type=jnp.float32)
    h2 = h2 + b2_ref[...]
    # lin3 + sigmoid (bias add / sigmoid in f32 — safe on v5e as well)
    h3 = jnp.dot(h2.astype(wdt), w3_ref[...],
                 preferred_element_type=jnp.float32)
    h3 = h3 + b3_ref[...]
    o_ref[...] = jax.nn.sigmoid(h3).astype(o_ref.dtype)


# ---------------------------------------------------------------------------
# One-time parameter preparation (hoisted out of the hot forward path)
# ---------------------------------------------------------------------------
def prepare_params(params, *, weights_dtype=None):
    """One-time weight prep:
      - lane-pad W3/b3 output dim to a multiple of 128 (lane-dense unmasked stores),
      - optional weight dtype cast (bf16 is fine on v5e/v6e/v7x: MXU does bf16 input
        with f32 accumulation; halves resident weight VMEM and weight DMA),
      - biases reshaped to (1, out) f32 rows for lane-major broadcast.
    Weights are stored (in_features, out_features). Returns a dict consumed by
    p_net_forward; call this once, not per forward."""
    z_dim, N = params["w1"].shape
    X_dim = params["w3"].shape[1]
    Xp = _round_up(X_dim, 128)
    wdt = weights_dtype if weights_dtype is not None else params["w1"].dtype

    w3 = params["w3"]
    b3 = params["b3"]
    if Xp != X_dim:
        w3 = jnp.pad(w3, ((0, 0), (0, Xp - X_dim)))
        b3 = jnp.pad(b3, ((0, Xp - X_dim),))

    return {
        "w1": params["w1"].astype(wdt),
        "w2": params["w2"].astype(wdt),
        "w3": w3.astype(wdt),
        "b1": params["b1"].reshape(1, N).astype(jnp.float32),
        "b2": params["b2"].reshape(1, N).astype(jnp.float32),
        "b3": b3.reshape(1, Xp).astype(jnp.float32),
        "dims": (z_dim, N, X_dim, Xp),
    }


# ---------------------------------------------------------------------------
# Batch-tile selection
# ---------------------------------------------------------------------------
def _choose_batch_tile(B, tb=None):
    """Pick the batch tile (rows per grid step).

    Heuristics (overridable via tb):
      * per-step overhead / HBM-bound regime -> favour big tiles (up to 1024),
      * prefer a tile that divides the (8-rounded) batch exactly, so no jnp.pad(x)
        copy and no wasted tail tile,
      * prefer an even number of grid steps so both v7x TensorCores get work
        (v5e/v6e have one TC, where only the "maximize tb" rule matters).
    """
    B8 = _round_up(max(B, 1), 8)
    if tb is not None:
        return min(_round_up(tb, 8), B8)
    if B8 <= 256:
        return B8  # single step; too small to split usefully
    best_key, best_tb = None, None
    for cand in range(1024, 255, -8):          # candidate tiles, multiples of 8
        if B8 % cand:
            continue                           # must divide exactly (no padding)
        steps = B8 // cand
        key = (steps % 2 == 0, cand)           # prefer even step count, then larger tile
        if best_key is None or key > best_key:
            best_key, best_tb = key, cand
    if best_tb is not None:
        return best_tb
    return min(512, B8)                        # no exact divisor in range: pad the tail


# ---------------------------------------------------------------------------
# Forward wrapper (hot path: no weight prep, no avoidable HBM copies)
# ---------------------------------------------------------------------------
def p_net_forward(x, prep, *, tb=None, out_dtype=jnp.float32,
                  return_padded=False, pipeline_buffers=None):
    """x: (B, z_dim) float32. prep: output of prepare_params().

    tb: batch tile override (rounded to a multiple of 8).
    out_dtype: output dtype; jnp.bfloat16 halves output writeback (dominant HBM
        stream) if downstream tolerates it.
    return_padded: if True, return the padded (Bp, Xp) slab and let the consumer
        slice (avoids a separate whole-output re-read/re-write in the hot path).
    pipeline_buffers: e.g. 3 to deepen x/out pipelining if DMA is still exposed.
    """
    z_dim, N, X_dim, Xp = prep["dims"]
    B = x.shape[0]
    assert x.shape[1] == z_dim

    tb = _choose_batch_tile(B, tb)
    Bp = _round_up(B, tb)
    xp = x if Bp == B else jnp.pad(x, ((0, Bp - B), (0, 0)))

    # VMEM budget: resident weights + biases + double-buffered x/out tiles + f32
    # intermediates. Raise the scoped limit when that exceeds the defaults
    # (16 MiB v5e, 32 MiB v6e/v7x); cap at 64 MiB (v7x physical VMEM per core).
    wbytes = jnp.dtype(prep["w1"].dtype).itemsize
    obytes = jnp.dtype(out_dtype).itemsize
    footprint = ((z_dim * N + N * N + N * Xp) * wbytes
                 + (2 * N + Xp) * 4
                 + 2 * (tb * z_dim * 4 + tb * Xp * obytes)
                 + 2 * tb * N * 4)
    vmem_limit = int(min(64 << 20, max(32 << 20, 2 * footprint)))

    if pipeline_buffers is None:
        x_spec = pl.BlockSpec((tb, z_dim), lambda i: (i, 0))
        o_spec = pl.BlockSpec((tb, Xp), lambda i: (i, 0))
    else:
        mode = pl.Buffered(pipeline_buffers)
        x_spec = pl.BlockSpec((tb, z_dim), lambda i: (i, 0), pipeline_mode=mode)
        o_spec = pl.BlockSpec((tb, Xp), lambda i: (i, 0), pipeline_mode=mode)

    out = pl.pallas_call(
        pnet_kernel,
        out_shape=jax.ShapeDtypeStruct((Bp, Xp), out_dtype),
        grid_spec=pltpu.PrefetchScalarGridSpec(
            num_scalar_prefetch=0,
            grid=(Bp // tb,),
            in_specs=[
                x_spec,                                        # x tile (pipelined)
                pl.BlockSpec((z_dim, N), lambda i: (0, 0)),    # W1 (resident)
                pl.BlockSpec((1, N), lambda i: (0, 0)),        # b1
                pl.BlockSpec((N, N), lambda i: (0, 0)),        # W2 (resident)
                pl.BlockSpec((1, N), lambda i: (0, 0)),        # b2
                pl.BlockSpec((N, Xp), lambda i: (0, 0)),       # W3 (resident, lane-padded)
                pl.BlockSpec((1, Xp), lambda i: (0, 0)),       # b3
            ],
            out_specs=o_spec,                                  # lane-dense output slab
        ),
        compiler_params=pltpu.CompilerParams(
            dimension_semantics=("parallel",),
            vmem_limit_bytes=vmem_limit,
        ),
    )(xp, prep["w1"], prep["b1"], prep["w2"], prep["b2"], prep["w3"], prep["b3"])

    if return_padded:
        return out               # (Bp, Xp) slab; consumer slices/fuses as needed
    return out[:B, :X_dim]


# ---------------------------------------------------------------------------
# Init + pure-JAX reference
# ---------------------------------------------------------------------------
def init_params(key, X_dim, N, z_dim):
    """Deterministic init mimicking nn.Linear's U(-1/sqrt(fan_in), 1/sqrt(fan_in)).
    Weights stored as (in_features, out_features)."""
    ks = jax.random.split(key, 6)

    def lin(kw, kb, fan_in, fan_out):
        bound = 1.0 / jnp.sqrt(fan_in)
        w = jax.random.uniform(kw, (fan_in, fan_out), jnp.float32, -bound, bound)
        b = jax.random.uniform(kb, (fan_out,), jnp.float32, -bound, bound)
        return w, b

    w1, b1 = lin(ks[0], ks[1], z_dim, N)
    w2, b2 = lin(ks[2], ks[3], N, N)
    w3, b3 = lin(ks[4], ks[5], N, X_dim)
    return {"w1": w1, "b1": b1, "w2": w2, "b2": b2, "w3": w3, "b3": b3}


def reference_forward(x, params):
    h1 = jnp.maximum(x @ params["w1"] + params["b1"], 0.0)
    h2 = h1 @ params["w2"] + params["b2"]
    h3 = h2 @ params["w3"] + params["b3"]
    return jax.nn.sigmoid(h3)


if __name__ == "__main__":
    # Shapes consistent with the module: P_net(X_dim, N, z_dim)
    z_dim, N, X_dim = 16, 128, 64

    key = jax.random.PRNGKey(0)
    k_param, k_x_small, k_x_big = jax.random.split(key, 3)
    params = init_params(k_param, X_dim, N, z_dim)

    # One-time parameter preparation (pad/cast/reshape hoisted out of the hot path).
    prep_f32 = prepare_params(params)
    prep_bf16 = prepare_params(params, weights_dtype=jnp.bfloat16)

    # 1) Tiny-batch demo (B=8): single grid step, lane-padded output path.
    x_small = jax.random.normal(k_x_small, (8, z_dim), jnp.float32)
    out_small = jax.block_until_ready(p_net_forward(x_small, prep_f32))
    ref_small = reference_forward(x_small, params)
    assert out_small.shape == (8, X_dim)
    assert jnp.allclose(out_small, ref_small, atol=1e-5, rtol=1e-5), "small-batch f32 mismatch"

    # 2) Larger batch (B=512): auto tile picks tb=256 -> grid=(2,) (even step count,
    #    exact division, no x padding), f32 weights / f32 output.
    x_big = jax.random.normal(k_x_big, (512, z_dim), jnp.float32)
    out_big = jax.block_until_ready(p_net_forward(x_big, prep_f32))
    ref_big = reference_forward(x_big, params)
    assert out_big.shape == (512, X_dim)
    assert jnp.allclose(out_big, ref_big, atol=1e-5, rtol=1e-5), "big-batch f32 mismatch"

    # 3) Hot-path variant: bf16 weights + bf16 output + padded-slab return
    #    (f32 MXU accumulation; looser tolerance from weight+activation quantization).
    out_bf16 = jax.block_until_ready(
        p_net_forward(x_big, prep_bf16, out_dtype=jnp.bfloat16, return_padded=True))
    assert out_bf16.shape == (512, _round_up(X_dim, 128))
    assert out_bf16.dtype == jnp.bfloat16
    assert jnp.allclose(out_bf16[:512, :X_dim].astype(jnp.float32), ref_big,
                        atol=3e-2, rtol=3e-2), "bf16 variant mismatch"

    print("KERNEL_OK")
</pallas_src>

<mosaic_0001>
module attributes {stable_mosaic.version = 11 : i64} {
  func.func @pnet_kernel(%arg0: i32, %arg1: memref<8x16xf32, #tpu.memory_space<vmem>>, %arg2: memref<16x128xf32, #tpu.memory_space<vmem>>, %arg3: memref<1x128xf32, #tpu.memory_space<vmem>>, %arg4: memref<128x128xf32, #tpu.memory_space<vmem>>, %arg5: memref<1x128xf32, #tpu.memory_space<vmem>>, %arg6: memref<128x128xf32, #tpu.memory_space<vmem>>, %arg7: memref<1x128xf32, #tpu.memory_space<vmem>>, %arg8: memref<8x128xf32, #tpu.memory_space<vmem>>) attributes {dimension_semantics = [#tpu.dimension_semantics<parallel>], iteration_bounds = array<i64: 1>, scalar_prefetch = 0 : i64, scratch_operands = 0 : i64, tpu.core_type = #tpu.core_type<tc>, window_params = [{transform_indices = @transform_0, window_bounds = array<i64: 8, 16>}, {pipeline_mode = #tpu.pipeline_mode<synchronous>, transform_indices = @transform_1, window_bounds = array<i64: 16, 128>}, {pipeline_mode = #tpu.pipeline_mode<synchronous>, transform_indices = @transform_2, window_bounds = array<i64: 1, 128>}, {pipeline_mode = #tpu.pipeline_mode<synchronous>, transform_indices = @transform_3, window_bounds = array<i64: 128, 128>}, {pipeline_mode = #tpu.pipeline_mode<synchronous>, transform_indices = @transform_4, window_bounds = array<i64: 1, 128>}, {pipeline_mode = #tpu.pipeline_mode<synchronous>, transform_indices = @transform_5, window_bounds = array<i64: 128, 128>}, {pipeline_mode = #tpu.pipeline_mode<synchronous>, transform_indices = @transform_6, window_bounds = array<i64: 1, 128>}, {transform_indices = @transform_7, window_bounds = array<i64: 8, 128>}]} {
    %c0 = arith.constant 0 : index
    %c0_0 = arith.constant 0 : index
    %0 = vector.load %arg1[%c0, %c0_0] : memref<8x16xf32, #tpu.memory_space<vmem>>, vector<8x16xf32>
    %c0_1 = arith.constant 0 : index
    %c0_2 = arith.constant 0 : index
    %1 = vector.load %arg2[%c0_1, %c0_2] : memref<16x128xf32, #tpu.memory_space<vmem>>, vector<16x128xf32>
    %cst = arith.constant dense<0.000000e+00> : vector<8x128xf32>
    %2 = tpu.matmul %0, %1, %cst {dimension_numbers = #tpu.dot_dimension_numbers<[1], [0], [0], [1], [0, 0, 1, 1], [], []>} : vector<8x16xf32>, vector<16x128xf32>, vector<8x128xf32> -> vector<8x128xf32>
    %c0_3 = arith.constant 0 : index
    %c0_4 = arith.constant 0 : index
    %3 = vector.load %arg3[%c0_3, %c0_4] : memref<1x128xf32, #tpu.memory_space<vmem>>, vector<1x128xf32>
    %4 = vector.broadcast %3 : vector<1x128xf32> to vector<8x128xf32>
    %5 = arith.addf %2, %4 : vector<8x128xf32>
    %cst_5 = arith.constant 0.000000e+00 : f32
    %6 = vector.broadcast %cst_5 : f32 to vector<8x128xf32>
    %7 = arith.maximumf %5, %6 : vector<8x128xf32>
    %c0_6 = arith.constant 0 : index
    %c0_7 = arith.constant 0 : index
    %8 = vector.load %arg4[%c0_6, %c0_7] : memref<128x128xf32, #tpu.memory_space<vmem>>, vector<128x128xf32>
    %cst_8 = arith.constant dense<0.000000e+00> : vector<8x128xf32>
    %9 = tpu.matmul %7, %8, %cst_8 {dimension_numbers = #tpu.dot_dimension_numbers<[1], [0], [0], [1], [0, 0, 1, 1], [], []>} : vector<8x128xf32>, vector<128x128xf32>, vector<8x128xf32> -> vector<8x128xf32>
    %c0_9 = arith.constant 0 : index
    %c0_10 = arith.constant 0 : index
    %10 = vector.load %arg5[%c0_9, %c0_10] : memref<1x128xf32, #tpu.memory_space<vmem>>, vector<1x128xf32>
    %11 = vector.broadcast %10 : vector<1x128xf32> to vector<8x128xf32>
    %12 = arith.addf %9, %11 : vector<8x128xf32>
    %c0_11 = arith.constant 0 : index
    %c0_12 = arith.constant 0 : index
    %13 = vector.load %arg6[%c0_11, %c0_12] : memref<128x128xf32, #tpu.memory_space<vmem>>, vector<128x128xf32>
    %cst_13 = arith.constant dense<0.000000e+00> : vector<8x128xf32>
    %14 = tpu.matmul %12, %13, %cst_13 {dimension_numbers = #tpu.dot_dimension_numbers<[1], [0], [0], [1], [0, 0, 1, 1], [], []>} : vector<8x128xf32>, vector<128x128xf32>, vector<8x128xf32> -> vector<8x128xf32>
    %c0_14 = arith.constant 0 : index
    %c0_15 = arith.constant 0 : index
    %15 = vector.load %arg7[%c0_14, %c0_15] : memref<1x128xf32, #tpu.memory_space<vmem>>, vector<1x128xf32>
    %16 = vector.broadcast %15 : vector<1x128xf32> to vector<8x128xf32>
    %17 = arith.addf %14, %16 : vector<8x128xf32>
    %18 = arith.negf %17 : vector<8x128xf32>
    %19 = math.exp %18 : vector<8x128xf32>
    %cst_16 = arith.constant 1.000000e+00 : f32
    %20 = vector.broadcast %cst_16 : f32 to vector<8x128xf32>
    %21 = arith.addf %20, %19 : vector<8x128xf32>
    %22 = arith.divf %20, %21 : vector<8x128xf32>
    %c0_17 = arith.constant 0 : index
    %c0_18 = arith.constant 0 : index
    %23 = vector.load %arg8[%c0_17, %c0_18] : memref<8x128xf32, #tpu.memory_space<vmem>>, vector<8x128xf32>
    tpu.vector_store %arg8[%c0_17, %c0_18], %22 {strides = array<i32>} : memref<8x128xf32, #tpu.memory_space<vmem>>, vector<8x128xf32>,
    return
  }
  func.func @transform_0(%arg0: i32) -> (i32, i32) {
    %c0_i32 = arith.constant 0 : i32
    %c0_i32_0 = arith.constant 0 : i32
    return %arg0, %c0_i32 : i32, i32
  }
  func.func @transform_1(%arg0: i32) -> (i32, i32) {
    %c0_i32 = arith.constant 0 : i32
    %c0_i32_0 = arith.constant 0 : i32
    %c0_i32_1 = arith.constant 0 : i32
    return %c0_i32, %c0_i32_0 : i32, i32
  }
  func.func @transform_2(%arg0: i32) -> (i32, i32) {
    %c0_i32 = arith.constant 0 : i32
    %c0_i32_0 = arith.constant 0 : i32
    %c0_i32_1 = arith.constant 0 : i32
    return %c0_i32, %c0_i32_0 : i32, i32
  }
  func.func @transform_3(%arg0: i32) -> (i32, i32) {
    %c0_i32 = arith.constant 0 : i32
    %c0_i32_0 = arith.constant 0 : i32
    %c0_i32_1 = arith.constant 0 : i32
    return %c0_i32, %c0_i32_0 : i32, i32
  }
  func.func @transform_4(%arg0: i32) -> (i32, i32) {
    %c0_i32 = arith.constant 0 : i32
    %c0_i32_0 = arith.constant 0 : i32
    %c0_i32_1 = arith.constant 0 : i32
    return %c0_i32, %c0_i32_0 : i32, i32
  }
  func.func @transform_5(%arg0: i32) -> (i32, i32) {
    %c0_i32 = arith.constant 0 : i32
    %c0_i32_0 = arith.constant 0 : i32
    %c0_i32_1 = arith.constant 0 : i32
    return %c0_i32, %c0_i32_0 : i32, i32
  }
  func.func @transform_6(%arg0: i32) -> (i32, i32) {
    %c0_i32 = arith.constant 0 : i32
    %c0_i32_0 = arith.constant 0 : i32
    %c0_i32_1 = arith.constant 0 : i32
    return %c0_i32, %c0_i32_0 : i32, i32
  }
  func.func @transform_7(%arg0: i32) -> (i32, i32) {
    %c0_i32 = arith.constant 0 : i32
    %c0_i32_0 = arith.constant 0 : i32
    return %arg0, %c0_i32 : i32, i32
  }
}

</mosaic_0001>

<bundles_post_ra>
// kernel: tpu_custom_call.1
= control target key start
LH: loop header
LB: loop body
LE: loop exit
PB: predicated region body
PF: predicated region fallthrough
CT: control target
= control target key end

     0   :  { %12 = vsyncpa [#allocation3], 0  ;;  %s454_s0 = inlined_call_operand.hbm [shape: f32[8,16], index: 0, kind: input, shape index: {}]   ;;  %s455_s1 = inlined_call_operand.hbm [shape: f32[16,128], index: 1, kind: input, shape index: {}]   ;;  %s456_s2 = inlined_call_operand.vmem [shape: f32[1,128], index: 2, kind: input, shape index: {}]   ;;  %s457_s3 = inlined_call_operand.hbm [shape: f32[128,128], index: 3, kind: input, shape index: {}]   ;;  %s458_s4 = inlined_call_operand.vmem [shape: f32[1,128], index: 4, kind: input, shape index: {}]   ;;  %s459_s5 = inlined_call_operand.hbm [shape: f32[128,128], index: 5, kind: input, shape index: {}]   ;;  %s460_s6 = inlined_call_operand.vmem [shape: f32[1,128], index: 6, kind: input, shape index: {}]   ;;  %s461_s7 = inlined_call_operand.hbm [shape: f32[8,128], index: 7, kind: output, shape index: {}]  }
   0x1   :  { %13 = vsyncpa [#allocation6], 0 }
   0x2   :  { %14 = vsyncpa [#allocation9], 0  ;;  %s31_s26 = sshll.u32 %s455_s1, 4  ;;  %s32_s26 = int_to_ptr.hbm [resolvable:$true] %s31_s26 }
   0x3   :  { %15 = vsyncpa [#allocation4], 0  ;;  %s383_s27 = smov [#allocation5]   ;;  %s21_s8 = sshll.u32 %s454_s0, 4  ;;  %s22_s8 = int_to_ptr.hbm [resolvable:$true] %s21_s8 }
   0x4   :  { %s33_s28 = sshll.u32 %s383_s27, 4  ;;  %s384_s9 = smov 128   ;;  %s34_s28 = int_to_ptr.vmem [resolvable:$true] %s33_s28 }
   0x5   :  { %s385_s10 = smov 8   ;;  %s386_s11 = smov [#allocation2]  }
   0x6   :  { %39 = dma.hbm_to_vmem [thread:$0]  %s32_s26, 256, %s34_s28, [#allocation6], %s384_s9, %s384_s9, %s385_s10  }
   0x7   :  { %s23_s12 = sshll.u32 %s386_s11, 4  ;;  %s46_s15 = sshll.u32 %s457_s3, 4  ;;  %s24_s12 = int_to_ptr.vmem [resolvable:$true] %s23_s12  ;;  %s47_s15 = int_to_ptr.hbm [resolvable:$true] %s46_s15 }
   0x8   :  { %26 = dma.hbm_to_vmem [thread:$0]  %s22_s8, 128, %s24_s12, [#allocation3]  }
   0x9   :  { %s61_s17 = sshll.u32 %s459_s5, 4  ;;  %s387_s18 = smov [#allocation7]   ;;  %s62_s17 = int_to_ptr.hbm [resolvable:$true] %s61_s17 }
   0xa   :  { %s48_s19 = sshll.u32 %s387_s18, 4  ;;  %s388_s0 = smov [#allocation8]   ;;  %s49_s19 = int_to_ptr.vmem [resolvable:$true] %s48_s19 }
   0xb   :  { %54 = dma.hbm_to_vmem [thread:$0]  %s47_s15, 2048, %s49_s19, [#allocation6], %s384_s9, %s384_s9, %s385_s10  }
   0xc   :  { %s63_s20 = sshll.u32 %s388_s0, 4  ;;  %s64_s20 = int_to_ptr.vmem [resolvable:$true] %s63_s20 }
   0xd   :  { %69 = dma.hbm_to_vmem [thread:$0]  %s62_s17, 2048, %s64_s20, [#allocation9], %s384_s9, %s384_s9, %s385_s10  }
   0xe   :  { %375 = dma.done.wait [#allocation3], 128  }
   0xf   :  { %376 = vsyncadd [#allocation3], 4294967168 }
  0x10   :  { %377 = dma.done.wait [#allocation6], 2304  }
  0x11   :  { %378 = vsyncadd [#allocation6], 4294964992 }
  0x12   :  { %379 = dma.done.wait [#allocation9], 2048  }
  0x13   :  { %380 = vsyncadd [#allocation9], 4294965248  ;;  %v90_v0 = vld [vmem:[#allocation5 + $0x8] sm:$0xff]  ;;  %v89_v1 = vld [vmem:[#allocation5] sm:$0xff]  ;;  %vm95_vm0 = vcmask 130048  }
  0x14   :  { %113 = vmatpush.msra.mxu0 %v90_v0  ;;  %v88_v2 = vld [vmem:[#allocation2] sm:$0xff]  ;;  %v135_v3 = vld [vmem:[#allocation7 + $0x78] sm:$0xff]  ;;  %v134_v4 = vld [vmem:[#allocation7 + $0x70] sm:$0xff] }
  0x15   :  { %140 = vmatpush.msra.mxu1 %v135_v3  ;;  %v133_v5 = vld [vmem:[#allocation7 + $0x68] sm:$0xff]  ;;  %v132_v6 = vld [vmem:[#allocation7 + $0x60] sm:$0xff]  ;;  %v131_v7 = vld [vmem:[#allocation7 + $0x58] sm:$0xff] }
  0x16   :  { %114 = vmatpush.msra.mxu0 %v89_v1  ;;  %v130_v8 = vld [vmem:[#allocation7 + $0x50] sm:$0xff]  ;;  %v129_v9 = vld [vmem:[#allocation7 + $0x48] sm:$0xff]  ;;  %v128_v10 = vld [vmem:[#allocation7 + $0x40] sm:$0xff] }
  0x17   :  { %239 = vmatmul.msk.f32.vlgmr.msra.gmra.mxu0 %vm95_vm0, %v88_v2  ;;  %141 = vmatpush.msra.mxu1 %v134_v4  ;;  %v127_v11 = vld [vmem:[#allocation7 + $0x38] sm:$0xff]  ;;  %v126_v12 = vld [vmem:[#allocation7 + $0x30] sm:$0xff]  ;;  %v125_v13 = vld [vmem:[#allocation7 + $0x28] sm:$0xff] }
  0x18   :  { %v124_v14 = vld [vmem:[#allocation7 + $0x20] sm:$0xff]  ;;  %v123_v15 = vld [vmem:[#allocation7 + $0x18] sm:$0xff]  ;;  %v122_v16 = vld [vmem:[#allocation7 + $0x10] sm:$0xff] }
  0x19   :  { %142 = vmatpush.msra.mxu1 %v133_v5  ;;  %v121_v17 = vld [vmem:[#allocation7 + $0x8] sm:$0xff]  ;;  %v120_v18 = vld [vmem:[#allocation7] sm:$0xff]  ;;  %v175_v19 = vld [vmem:[#allocation8 + $0x78] sm:$0xff] }
  0x1a   :  { %v174_v20 = vld [vmem:[#allocation8 + $0x70] sm:$0xff]  ;;  %180 = vmatpush.msra.mxu2 %v175_v19  ;;  %v173_v21 = vld [vmem:[#allocation8 + $0x68] sm:$0xff]  ;;  %v172_v22 = vld [vmem:[#allocation8 + $0x60] sm:$0xff] }
  0x1b   :  { %143 = vmatpush.msra.mxu1 %v132_v6  ;;  %v171_v23 = vld [vmem:[#allocation8 + $0x58] sm:$0xff]  ;;  %v170_v24 = vld [vmem:[#allocation8 + $0x50] sm:$0xff]  ;;  %v169_v25 = vld [vmem:[#allocation8 + $0x48] sm:$0xff] }
  0x1c   :  { %181 = vmatpush.msra.mxu2 %v174_v20  ;;  %v168_v26 = vld [vmem:[#allocation8 + $0x40] sm:$0xff]  ;;  %v167_v27 = vld [vmem:[#allocation8 + $0x38] sm:$0xff]  ;;  %v166_v28 = vld [vmem:[#allocation8 + $0x30] sm:$0xff] }
  0x1d   :  { %144 = vmatpush.msra.mxu1 %v131_v7  ;;  %v165_v29 = vld [vmem:[#allocation8 + $0x28] sm:$0xff]  ;;  %v164_v30 = vld [vmem:[#allocation8 + $0x20] sm:$0xff]  ;;  %v163_v31 = vld [vmem:[#allocation8 + $0x18] sm:$0xff] }
  0x1e   :  { %182 = vmatpush.msra.mxu2 %v173_v21  ;;  %v248_v32 = vld [vmem:[%s456_s2] ss:$0 sm:$0xff]  ;;  %v162_v33 = vld [vmem:[#allocation8 + $0x10] sm:$0xff]  ;;  %v160_v38 = vld [vmem:[#allocation8] sm:$0xff] }
  0x1f   :  { %145 = vmatpush.msra.mxu1 %v130_v8  ;;  %v161_v37 = vld [vmem:[#allocation8 + $0x8] sm:$0xff] }
  0x20   :  { %183 = vmatpush.msra.mxu2 %v172_v22  ;;  %v249_v39 = vld [vmem:[%s458_s4] ss:$0 sm:$0xff]  ;;  %s389_s4 = smov [#allocation10]  }
  0x21   :  { %146 = vmatpush.msra.mxu1 %v129_v9  ;;  %v250_v42 = vld [vmem:[%s460_s6] ss:$0 sm:$0xff]  ;;  %s225_s24 = sshll.u32 %s389_s4, 4  ;;  %s227_s6 = sshll.u32 %s461_s7, 4  ;;  %s226_s24 = int_to_ptr.vmem [resolvable:$true] %s225_s24  ;;  %s228_s6 = int_to_ptr.hbm [resolvable:$true] %s227_s6 }
  0x22   :  { %184 = vmatpush.msra.mxu2 %v171_v23 }
  0x23   :  { %147 = vmatpush.msra.mxu1 %v128_v10 }
  0x24   :  { %185 = vmatpush.msra.mxu2 %v170_v24 }
  0x25   :  { %148 = vmatpush.msra.mxu1 %v127_v11 }
  0x26   :  { %186 = vmatpush.msra.mxu2 %v169_v25 }
  0x27   :  { %149 = vmatpush.msra.mxu1 %v126_v12 }
  0x28   :  { %187 = vmatpush.msra.mxu2 %v168_v26 }
  0x29   :  { %150 = vmatpush.msra.mxu1 %v125_v13 }
  0x2a   :  { %188 = vmatpush.msra.mxu2 %v167_v27 }
  0x2b   :  { %151 = vmatpush.msra.mxu1 %v124_v14 }
  0x2c   :  { %189 = vmatpush.msra.mxu2 %v166_v28 }
  0x2d   :  { %152 = vmatpush.msra.mxu1 %v123_v15 }
  0x2e   :  { %190 = vmatpush.msra.mxu2 %v165_v29 }
  0x2f   :  { %153 = vmatpush.msra.mxu1 %v122_v16 }
  0x30   :  { %191 = vmatpush.msra.mxu2 %v164_v30 }
  0x31   :  { %154 = vmatpush.msra.mxu1 %v121_v17 }
  0x32   :  { %192 = vmatpush.msra.mxu2 %v163_v31 }
  0x33   :  { %155 = vmatpush.msra.mxu1 %v120_v18 }
  0x34   :  { %193 = vmatpush.msra.mxu2 %v162_v33 }
  0x36   :  { %194 = vmatpush.msra.mxu2 %v161_v37 }
  0x38   :  { %195 = vmatpush.msra.mxu2 %v160_v38 }
  0x94   :  { %v116_v34 = vpop.f32.mrf.mxu0 }
  0x95   :  { %v117_v35 = vadd.f32 %v248_v32, %v116_v34 }
  0x97   :  { %v119_v36 = vmax.f32 %v117_v35, 0.0 }
  0x99   :  { %156 = vmatmul.f32.vlgmr.msra.gmra.mxu1 %v119_v36 }
 0x116   :  { %v157_v40 = vpop.f32.mrf.mxu1 }
 0x117   :  { %v158_v41 = vadd.f32 %v249_v39, %v157_v40 }
 0x119   :  { %196 = vmatmul.f32.vlgmr.msra.gmra.mxu2 %v158_v41 }
 0x19c   :  { %v197_v43 = vpop.f32.mrf.mxu2 }
 0x19d   :  { %v198_v44 = vadd.f32 %v250_v42, %v197_v43 }
 0x19f   :  { %v240_v45 = vmul.f32 -1.442695, %v198_v44 }
 0x1a1   :  { %251 = vpow2.f32 %v240_v45 }
 0x1a7   :  { %v252_v46 = vpop.eup %251 }
 0x1a8   :  { %v203_v47 = vadd.f32 1.0, %v252_v46 }
 0x1aa   :  { %253 = vrcp.f32 %v203_v47  ;;  %v215_v51 = vand.u32 2147483648, %v203_v47  ;;  %v213_v53 = vand.u32 2147483647, %v203_v47  ;;  %vm209_vm2 = vweird.f32 %v203_v47 }
 0x1ac   :  { %v216_v55 = vor.u32 1.1754944e-38, %v215_v51  ;;  %vm214_vm4 = vcmp.eq.f32.partialorder %v213_v53, 8.507059e+37 }
 0x1b0   :  { %v254_v48 = vpop.eup %253 }
 0x1b1   :  { %v205_v49 = vmul.f32 %v254_v48, %v203_v47  ;;  %vm210_vm1 = vweird.f32 %v254_v48 }
 0x1b2   :  { %vm211_vm3 = vmor %vm209_vm2, %vm210_vm1 }
 0x1b3   :  { %v206_v50 = vsub.f32 1.0, %v205_v49 }
 0x1b5   :  { %v207_v52 = vmul.f32 %v254_v48, %v206_v50 }
 0x1b7   :  { %v208_v54 = vadd.f32 %v254_v48, %v207_v52 }
 0x1b9   :  { %v212_v56 = vsel %vm211_vm3, %v254_v48, %v208_v54 }
 0x1ba   :  { %v217_v57 = vsel %vm214_vm4, %v216_v55, %v212_v56 }
 0x1bb   :  { %219 = vst [vmem:[#allocation10] sm:$0xff] %v217_v57 }
 0x1bc   :  { %230 = dma.vmem_to_hbm [thread:$0]  %s226_s24, 128, %s228_s6, [#allocation4]  }
 0x1bd   :  { %381 = dma.done.wait [#allocation4], 128  }
 0x1be   :  { %382 = vsyncadd [#allocation4], 4294967168 }
 0x1bf   :  { %235 = vsyncpa [#allocation3], 1 }
 0x1c0   :  { %236 = vsyncpa [#allocation6], 1 }
 0x1c1   :  { %237 = vsyncpa [#allocation9], 1 }
 0x1c2   :  { %238 = vsyncpa [#allocation4], 1 }

</bundles_post_ra>
